<compile_context>
chip_gen: v7x
topology: tpu7x:2x2x1
jax: 0.10.0
libtpu: 0.0.40
codegen_flags: <defaults>
</compile_context>

<pallas_src>
import jax
import jax.numpy as jnp
from jax.experimental import pallas as pl
from jax.experimental.pallas import tpu as pltpu


# ---------------------------------------------------------------------------
# Parameter preparation (pure JAX glue; weight-sized work only)
# ---------------------------------------------------------------------------
def _fold_bn(w, b, gamma, beta, mean, var, eps):
    """Fold inference-mode BatchNorm into the conv weight/bias."""
    s = gamma / jnp.sqrt(var + eps)               # (Cout,)
    w_eff = w * s[:, None, None, None]            # (Cout, Cin, 3, 3)
    b_eff = (b - mean) * s + beta                 # (Cout,)
    return w_eff, b_eff


def _band_weight(w_eff, W):
    """(Cout, Cin, 3, 3) -> (W*Cin, 3*W*Cout) fused banded weight matrix.

    Column block ky (of width W*Cout) holds the vertical tap ky; within a block:
    A[wi*Cin + ci, ky*W*Cout + wo*Cout + co] = w_eff[co, ci, ky, wi - wo + 1]
    when |wi - wo| <= 1, else 0.  The kx taps, the Cin contraction and the
    horizontal 'SAME' zero padding are encoded in the band structure, so one
    conv over a padded image is a single lane-dense matmul (K = W*Cin, and the
    three ky taps share it), followed by a shifted row sum.
    """
    Cout, Cin, _, _ = w_eff.shape
    wi = jnp.arange(W)[:, None]
    wo = jnp.arange(W)[None, :]
    kx = wi - wo + 1                                          # (W, W)
    valid = ((kx >= 0) & (kx <= 2)).astype(w_eff.dtype)
    kxc = jnp.clip(kx, 0, 2)
    wt = jnp.transpose(w_eff, (2, 3, 1, 0))                   # (ky, kx, Cin, Cout)
    a = wt[:, kxc, :, :] * valid[None, :, :, None, None]      # (ky, wi, wo, Cin, Cout)
    a = jnp.transpose(a, (1, 3, 0, 2, 4))                     # (wi, Cin, ky, wo, Cout)
    return a.reshape(W * Cin, 3 * W * Cout)


def _bias_lane(b_eff, W):
    """(C,) -> (1, W*C) bias vector in the packed (w, c) lane layout."""
    return jnp.tile(b_eff, W).reshape(1, W * b_eff.shape[0])


# ---------------------------------------------------------------------------
# Fused Pallas kernel (one grid step == one image)
# ---------------------------------------------------------------------------
def _make_kernel(H, L):
    def kernel(x_ref, a1_ref, a2_ref, b1_ref, b2_ref, o_ref, p1_ref, p2_ref):
        # Zero ONLY the two 'SAME' padding rows (top row 0, bottom row H+1).
        # Scratch rows beyond H+1 are never read back: each LHS row of the
        # matmul only contributes to its own output row, so leftover garbage
        # there is harmless.
        zrow = jnp.zeros((1, L), dtype=p1_ref.dtype)
        p1_ref[0:1, :] = zrow
        p1_ref[H + 1:H + 2, :] = zrow
        p2_ref[0:1, :] = zrow
        p2_ref[H + 1:H + 2, :] = zrow

        x = x_ref[...]                                   # (H, L) f32
        # Interior copy at row offset +1 (intrinsic to SAME padding), bf16 cast
        # for the MXU operand.
        p1_ref[1:H + 1, :] = x.astype(p1_ref.dtype)

        def conv(p_ref, a_ref):
            # One fused MXU matmul per conv: (Rp, L)bf16 @ (L, 3L)bf16 -> f32.
            f = jnp.dot(p_ref[...], a_ref[...],
                        preferred_element_type=jnp.float32)
            # g[r] = f_ky0[r] + f_ky1[r+1] + f_ky2[r+2]; column slices are
            # 128-lane aligned, row offsets 0/1/2 are the intrinsic ky shifts.
            return (f[0:H, 0:L]
                    + f[1:H + 1, L:2 * L]
                    + f[2:H + 2, 2 * L:3 * L])

        # conv1 + folded BN1 + ReLU (intermediate never leaves VMEM), f32 math.
        h1 = jnp.maximum(conv(p1_ref, a1_ref) + b1_ref[...], 0.0)   # (H, L)
        p2_ref[1:H + 1, :] = h1.astype(p2_ref.dtype)

        # conv2 + folded BN2 + residual add + ReLU, lane-dense (128-wide) store.
        g2 = conv(p2_ref, a2_ref) + b2_ref[...] + x                 # f32
        o_ref[...] = jnp.maximum(g2, 0.0)

    return kernel


# ---------------------------------------------------------------------------
# Wrappers
# ---------------------------------------------------------------------------
def resblock_pallas_nhwc(x_nhwc,
                         w1, b1, gamma1, beta1, mean1, var1,
                         w2, b2, gamma2, beta2, mean2, var2,
                         eps=1e-5):
    """Fused ResBlock on NHWC input (no layout transposes; reshape only)."""
    N, H, W, C = x_nhwc.shape
    assert w1.shape == (C, C, 3, 3) and w2.shape == (C, C, 3, 3), \
        "residual add requires in_ch == out_ch"
    L = W * C                       # packed lane width (W*C), ideally mult of 128
    Rp = ((H + 2 + 7) // 8) * 8     # 8-aligned padded-row scratch height

    w1e, b1e = _fold_bn(w1, b1, gamma1, beta1, mean1, var1, eps)
    w2e, b2e = _fold_bn(w2, b2, gamma2, beta2, mean2, var2, eps)
    a1 = _band_weight(w1e, W).astype(jnp.bfloat16)    # (L, 3L) bf16
    a2 = _band_weight(w2e, W).astype(jnp.bfloat16)    # (L, 3L) bf16
    bias1 = _bias_lane(b1e, W).astype(jnp.float32)    # (1, L)
    bias2 = _bias_lane(b2e, W).astype(jnp.float32)    # (1, L)

    x2d = x_nhwc.reshape(N * H, L).astype(jnp.float32)   # pure reshape, no copy

    flops = int(N) * 4 * Rp * L * (3 * L)                 # 2 convs x 2*M*K*Nmm
    bytes_accessed = (2 * N * H * L * 4                    # x read + out write
                      + 2 * L * 3 * L * 2                  # bf16 weight tables
                      + 2 * L * 4)                         # biases

    out2d = pl.pallas_call(
        _make_kernel(H, L),
        out_shape=jax.ShapeDtypeStruct((N * H, L), jnp.float32),
        grid=(N,),
        in_specs=[
            pl.BlockSpec((H, L), lambda n: (n, 0)),          # x block (one image)
            pl.BlockSpec((L, 3 * L), lambda n: (0, 0)),      # conv1 banded weights
            pl.BlockSpec((L, 3 * L), lambda n: (0, 0)),      # conv2 banded weights
            pl.BlockSpec((1, L), lambda n: (0, 0)),          # bias1 (lane layout)
            pl.BlockSpec((1, L), lambda n: (0, 0)),          # bias2 (lane layout)
        ],
        out_specs=pl.BlockSpec((H, L), lambda n: (n, 0)),
        scratch_shapes=[
            pltpu.VMEM((Rp, L), jnp.bfloat16),               # padded conv1 input
            pltpu.VMEM((Rp, L), jnp.bfloat16),               # padded conv2 input
        ],
        compiler_params=pltpu.CompilerParams(
            dimension_semantics=("parallel",)),
        cost_estimate=pl.CostEstimate(
            flops=flops, transcendentals=0, bytes_accessed=bytes_accessed),
    )(x2d, a1, a2, bias1, bias2)

    return out2d.reshape(N, H, W, C)


def resblock_pallas(x_nchw,
                    w1, b1, gamma1, beta1, mean1, var1,
                    w2, b2, gamma2, beta2, mean2, var2,
                    eps=1e-5):
    """NCHW wrapper matching the PyTorch module layout.

    The transposes here are only for drop-in PyTorch-layout compatibility; in a
    real model keep activations in NHWC end-to-end and call
    resblock_pallas_nhwc directly (one HBM read + one write of the activation).
    """
    x_nhwc = jnp.transpose(x_nchw, (0, 2, 3, 1))
    out = resblock_pallas_nhwc(x_nhwc,
                               w1, b1, gamma1, beta1, mean1, var1,
                               w2, b2, gamma2, beta2, mean2, var2, eps)
    return jnp.transpose(out, (0, 3, 1, 2))


# ---------------------------------------------------------------------------
# Pure-JAX reference (eval-mode BatchNorm), f32
# ---------------------------------------------------------------------------
def resblock_reference(x, w1, b1, gamma1, beta1, mean1, var1,
                       w2, b2, gamma2, beta2, mean2, var2, eps=1e-5):
    def conv(v, w, b):
        y = jax.lax.conv_general_dilated(
            v, w, window_strides=(1, 1), padding="SAME",
            dimension_numbers=("NCHW", "OIHW", "NCHW"))
        return y + b[None, :, None, None]

    def bn(v, gamma, beta, mean, var):
        s = gamma / jnp.sqrt(var + eps)
        return (v - mean[None, :, None, None]) * s[None, :, None, None] \
            + beta[None, :, None, None]

    out = jnp.maximum(bn(conv(x, w1, b1), gamma1, beta1, mean1, var1), 0.0)
    out = bn(conv(out, w2, b2), gamma2, beta2, mean2, var2)
    return jnp.maximum(out + x, 0.0)


if __name__ == "__main__":
    # ResBlock(in_ch=8, out_ch=8): residual add requires in_ch == out_ch.
    # W * C = 128 -> exactly one lane group (lane-dense activations).
    N, C, H, W = 2, 8, 16, 16
    eps = 1e-5

    key = jax.random.PRNGKey(0)
    ks = jax.random.split(key, 13)
    x = jax.random.normal(ks[0], (N, C, H, W), dtype=jnp.float32)

    w1 = 0.1 * jax.random.normal(ks[1], (C, C, 3, 3), dtype=jnp.float32)
    b1 = 0.1 * jax.random.normal(ks[2], (C,), dtype=jnp.float32)
    gamma1 = 1.0 + 0.1 * jax.random.normal(ks[3], (C,), dtype=jnp.float32)
    beta1 = 0.1 * jax.random.normal(ks[4], (C,), dtype=jnp.float32)
    mean1 = 0.1 * jax.random.normal(ks[5], (C,), dtype=jnp.float32)
    var1 = 1.0 + 0.1 * jnp.abs(jax.random.normal(ks[6], (C,), dtype=jnp.float32))

    w2 = 0.1 * jax.random.normal(ks[7], (C, C, 3, 3), dtype=jnp.float32)
    b2 = 0.1 * jax.random.normal(ks[8], (C,), dtype=jnp.float32)
    gamma2 = 1.0 + 0.1 * jax.random.normal(ks[9], (C,), dtype=jnp.float32)
    beta2 = 0.1 * jax.random.normal(ks[10], (C,), dtype=jnp.float32)
    mean2 = 0.1 * jax.random.normal(ks[11], (C,), dtype=jnp.float32)
    var2 = 1.0 + 0.1 * jnp.abs(jax.random.normal(ks[12], (C,), dtype=jnp.float32))

    out = resblock_pallas(x, w1, b1, gamma1, beta1, mean1, var1,
                          w2, b2, gamma2, beta2, mean2, var2, eps)
    out = jax.block_until_ready(out)

    ref = resblock_reference(x, w1, b1, gamma1, beta1, mean1, var1,
                             w2, b2, gamma2, beta2, mean2, var2, eps)
    assert out.shape == (N, C, H, W), out.shape
    max_err = float(jnp.max(jnp.abs(out - ref)))
    # bf16 matmul operands (weights + conv inputs) with f32 accumulation:
    # ~1e-2-level agreement expected; tolerance loosened accordingly.
    assert jnp.allclose(out, ref, atol=5e-2, rtol=5e-2), max_err

    print("KERNEL_OK")
</pallas_src>

<mosaic_0001>
module attributes {stable_mosaic.version = 11 : i64} {
  func.func @kernel(%arg0: i32, %arg1: memref<16x128xf32, #tpu.memory_space<vmem>>, %arg2: memref<128x384xbf16, #tpu.memory_space<vmem>>, %arg3: memref<128x384xbf16, #tpu.memory_space<vmem>>, %arg4: memref<1x128xf32, #tpu.memory_space<vmem>>, %arg5: memref<1x128xf32, #tpu.memory_space<vmem>>, %arg6: memref<16x128xf32, #tpu.memory_space<vmem>>, %arg7: memref<24x128xbf16, #tpu.memory_space<vmem>>, %arg8: memref<24x128xbf16, #tpu.memory_space<vmem>>) attributes {dimension_semantics = [#tpu.dimension_semantics<parallel>], iteration_bounds = array<i64: 2>, scalar_prefetch = 0 : i64, scratch_operands = 2 : i64, tpu.core_type = #tpu.core_type<tc>, window_params = [{transform_indices = @transform_0, window_bounds = array<i64: 16, 128>}, {pipeline_mode = #tpu.pipeline_mode<synchronous>, transform_indices = @transform_1, window_bounds = array<i64: 128, 384>}, {pipeline_mode = #tpu.pipeline_mode<synchronous>, transform_indices = @transform_2, window_bounds = array<i64: 128, 384>}, {pipeline_mode = #tpu.pipeline_mode<synchronous>, transform_indices = @transform_3, window_bounds = array<i64: 1, 128>}, {pipeline_mode = #tpu.pipeline_mode<synchronous>, transform_indices = @transform_4, window_bounds = array<i64: 1, 128>}, {transform_indices = @transform_5, window_bounds = array<i64: 16, 128>}]} {
    %cst = arith.constant 0.000000e+00 : bf16
    %0 = vector.broadcast %cst : bf16 to vector<1x128xbf16>
    %c0 = arith.constant 0 : index
    %c0_0 = arith.constant 0 : index
    %1 = vector.load %arg7[%c0, %c0_0] : memref<24x128xbf16, #tpu.memory_space<vmem>>, vector<1x128xbf16>
    tpu.vector_store %arg7[%c0, %c0_0], %0 {strides = array<i32>} : memref<24x128xbf16, #tpu.memory_space<vmem>>, vector<1x128xbf16>,
    %c17 = arith.constant 17 : index
    %c0_1 = arith.constant 0 : index
    %2 = vector.load %arg7[%c17, %c0_1] : memref<24x128xbf16, #tpu.memory_space<vmem>>, vector<1x128xbf16>
    tpu.vector_store %arg7[%c17, %c0_1], %0 {strides = array<i32>} : memref<24x128xbf16, #tpu.memory_space<vmem>>, vector<1x128xbf16>,
    %c0_2 = arith.constant 0 : index
    %c0_3 = arith.constant 0 : index
    %3 = vector.load %arg8[%c0_2, %c0_3] : memref<24x128xbf16, #tpu.memory_space<vmem>>, vector<1x128xbf16>
    tpu.vector_store %arg8[%c0_2, %c0_3], %0 {strides = array<i32>} : memref<24x128xbf16, #tpu.memory_space<vmem>>, vector<1x128xbf16>,
    %c17_4 = arith.constant 17 : index
    %c0_5 = arith.constant 0 : index
    %4 = vector.load %arg8[%c17_4, %c0_5] : memref<24x128xbf16, #tpu.memory_space<vmem>>, vector<1x128xbf16>
    tpu.vector_store %arg8[%c17_4, %c0_5], %0 {strides = array<i32>} : memref<24x128xbf16, #tpu.memory_space<vmem>>, vector<1x128xbf16>,
    %c0_6 = arith.constant 0 : index
    %c0_7 = arith.constant 0 : index
    %5 = vector.load %arg1[%c0_6, %c0_7] : memref<16x128xf32, #tpu.memory_space<vmem>>, vector<16x128xf32>
    %6 = arith.truncf %5 : vector<16x128xf32> to vector<16x128xbf16>
    %c1 = arith.constant 1 : index
    %c0_8 = arith.constant 0 : index
    %7 = vector.load %arg7[%c1, %c0_8] : memref<24x128xbf16, #tpu.memory_space<vmem>>, vector<16x128xbf16>
    tpu.vector_store %arg7[%c1, %c0_8], %6 {strides = array<i32>} : memref<24x128xbf16, #tpu.memory_space<vmem>>, vector<16x128xbf16>,
    %c0_9 = arith.constant 0 : index
    %c0_10 = arith.constant 0 : index
    %8 = vector.load %arg7[%c0_9, %c0_10] : memref<24x128xbf16, #tpu.memory_space<vmem>>, vector<24x128xbf16>
    %c0_11 = arith.constant 0 : index
    %c0_12 = arith.constant 0 : index
    %9 = vector.load %arg2[%c0_11, %c0_12] : memref<128x384xbf16, #tpu.memory_space<vmem>>, vector<128x384xbf16>
    %cst_13 = arith.constant dense<0.000000e+00> : vector<24x384xf32>
    %10 = tpu.matmul %8, %9, %cst_13 {dimension_numbers = #tpu.dot_dimension_numbers<[1], [0], [0], [1], [0, 0, 1, 1], [], []>} : vector<24x128xbf16>, vector<128x384xbf16>, vector<24x384xf32> -> vector<24x384xf32>
    %11 = vector.extract_strided_slice %10 {offsets = [0, 0], sizes = [16, 128], strides = [1, 1]} : vector<24x384xf32> to vector<16x128xf32>
    %12 = vector.extract_strided_slice %10 {offsets = [1, 128], sizes = [16, 128], strides = [1, 1]} : vector<24x384xf32> to vector<16x128xf32>
    %13 = arith.addf %11, %12 : vector<16x128xf32>
    %14 = vector.extract_strided_slice %10 {offsets = [2, 256], sizes = [16, 128], strides = [1, 1]} : vector<24x384xf32> to vector<16x128xf32>
    %15 = arith.addf %13, %14 : vector<16x128xf32>
    %c0_14 = arith.constant 0 : index
    %c0_15 = arith.constant 0 : index
    %16 = vector.load %arg4[%c0_14, %c0_15] : memref<1x128xf32, #tpu.memory_space<vmem>>, vector<1x128xf32>
    %17 = vector.broadcast %16 : vector<1x128xf32> to vector<16x128xf32>
    %18 = arith.addf %15, %17 : vector<16x128xf32>
    %cst_16 = arith.constant 0.000000e+00 : f32
    %19 = vector.broadcast %cst_16 : f32 to vector<16x128xf32>
    %20 = arith.maximumf %18, %19 : vector<16x128xf32>
    %21 = arith.truncf %20 : vector<16x128xf32> to vector<16x128xbf16>
    %c1_17 = arith.constant 1 : index
    %c0_18 = arith.constant 0 : index
    %22 = vector.load %arg8[%c1_17, %c0_18] : memref<24x128xbf16, #tpu.memory_space<vmem>>, vector<16x128xbf16>
    tpu.vector_store %arg8[%c1_17, %c0_18], %21 {strides = array<i32>} : memref<24x128xbf16, #tpu.memory_space<vmem>>, vector<16x128xbf16>,
    %c0_19 = arith.constant 0 : index
    %c0_20 = arith.constant 0 : index
    %23 = vector.load %arg8[%c0_19, %c0_20] : memref<24x128xbf16, #tpu.memory_space<vmem>>, vector<24x128xbf16>
    %c0_21 = arith.constant 0 : index
    %c0_22 = arith.constant 0 : index
    %24 = vector.load %arg3[%c0_21, %c0_22] : memref<128x384xbf16, #tpu.memory_space<vmem>>, vector<128x384xbf16>
    %cst_23 = arith.constant dense<0.000000e+00> : vector<24x384xf32>
    %25 = tpu.matmul %23, %24, %cst_23 {dimension_numbers = #tpu.dot_dimension_numbers<[1], [0], [0], [1], [0, 0, 1, 1], [], []>} : vector<24x128xbf16>, vector<128x384xbf16>, vector<24x384xf32> -> vector<24x384xf32>
    %26 = vector.extract_strided_slice %25 {offsets = [0, 0], sizes = [16, 128], strides = [1, 1]} : vector<24x384xf32> to vector<16x128xf32>
    %27 = vector.extract_strided_slice %25 {offsets = [1, 128], sizes = [16, 128], strides = [1, 1]} : vector<24x384xf32> to vector<16x128xf32>
    %28 = arith.addf %26, %27 : vector<16x128xf32>
    %29 = vector.extract_strided_slice %25 {offsets = [2, 256], sizes = [16, 128], strides = [1, 1]} : vector<24x384xf32> to vector<16x128xf32>
    %30 = arith.addf %28, %29 : vector<16x128xf32>
    %c0_24 = arith.constant 0 : index
    %c0_25 = arith.constant 0 : index
    %31 = vector.load %arg5[%c0_24, %c0_25] : memref<1x128xf32, #tpu.memory_space<vmem>>, vector<1x128xf32>
    %32 = vector.broadcast %31 : vector<1x128xf32> to vector<16x128xf32>
    %33 = arith.addf %30, %32 : vector<16x128xf32>
    %34 = arith.addf %33, %5 : vector<16x128xf32>
    %cst_26 = arith.constant 0.000000e+00 : f32
    %35 = vector.broadcast %cst_26 : f32 to vector<16x128xf32>
    %36 = arith.maximumf %34, %35 : vector<16x128xf32>
    %c0_27 = arith.constant 0 : index
    %c0_28 = arith.constant 0 : index
    %37 = vector.load %arg6[%c0_27, %c0_28] : memref<16x128xf32, #tpu.memory_space<vmem>>, vector<16x128xf32>
    tpu.vector_store %arg6[%c0_27, %c0_28], %36 {strides = array<i32>} : memref<16x128xf32, #tpu.memory_space<vmem>>, vector<16x128xf32>,
    return
  }
  func.func @transform_0(%arg0: i32) -> (i32, i32) {
    %c0_i32 = arith.constant 0 : i32
    %c0_i32_0 = arith.constant 0 : i32
    return %arg0, %c0_i32 : i32, i32
  }
  func.func @transform_1(%arg0: i32) -> (i32, i32) {
    %c0_i32 = arith.constant 0 : i32
    %c0_i32_0 = arith.constant 0 : i32
    %c0_i32_1 = arith.constant 0 : i32
    return %c0_i32, %c0_i32_0 : i32, i32
  }
  func.func @transform_2(%arg0: i32) -> (i32, i32) {
    %c0_i32 = arith.constant 0 : i32
    %c0_i32_0 = arith.constant 0 : i32
    %c0_i32_1 = arith.constant 0 : i32
    return %c0_i32, %c0_i32_0 : i32, i32
  }
  func.func @transform_3(%arg0: i32) -> (i32, i32) {
    %c0_i32 = arith.constant 0 : i32
    %c0_i32_0 = arith.constant 0 : i32
    %c0_i32_1 = arith.constant 0 : i32
    return %c0_i32, %c0_i32_0 : i32, i32
  }
  func.func @transform_4(%arg0: i32) -> (i32, i32) {
    %c0_i32 = arith.constant 0 : i32
    %c0_i32_0 = arith.constant 0 : i32
    %c0_i32_1 = arith.constant 0 : i32
    return %c0_i32, %c0_i32_0 : i32, i32
  }
  func.func @transform_5(%arg0: i32) -> (i32, i32) {
    %c0_i32 = arith.constant 0 : i32
    %c0_i32_0 = arith.constant 0 : i32
    return %arg0, %c0_i32 : i32, i32
  }
}

</mosaic_0001>

<bundles_post_ra>
// kernel: tpu_custom_call.1
= control target key start
LH: loop header
LB: loop body
LE: loop exit
PB: predicated region body
PF: predicated region fallthrough
CT: control target
= control target key end

     0   :  { %10 = vsyncpa [#allocation5], 0  ;;  %s1882_s0 = inlined_call_operand.hbm [shape: f32[32,128], index: 0, kind: input, shape index: {}]   ;;  %s1883_s1 = inlined_call_operand.hbm [shape: bf16[128,384], index: 1, kind: input, shape index: {}]   ;;  %s1884_s2 = inlined_call_operand.hbm [shape: bf16[128,384], index: 2, kind: input, shape index: {}]   ;;  %s1885_s3 = inlined_call_operand.vmem [shape: f32[1,128], index: 3, kind: input, shape index: {}]   ;;  %s1886_s4 = inlined_call_operand.vmem [shape: f32[1,128], index: 4, kind: input, shape index: {}]   ;;  %s1887_s5 = inlined_call_operand.hbm [shape: f32[32,128], index: 5, kind: output, shape index: {}]  }
   0x1   :  { %12 = vsyncpa [#allocation5 + $0x1], 0 }
   0x2   :  { %13 = vsyncpa [#allocation8], 0 }
   0x3   :  { %14 = vsyncpa [#allocation6], 0 }
   0x4   :  { %16 = vsyncpa [#allocation6 + $0x1], 0  ;;  %s1571_s18 = smov 0   ;;  %s1573_s19 = smov 0  }
   0x5   :  { %s1575_s20 = smov 0   ;;  %s1577_s21 = smov 0  }
   0x6 LB: > { %s1592_s22 = sadd.s32 4294967295, %s1528_s21   ;;  %s1088_s23 = sadd.s32 4294967294, %s1528_s21   ;;  %s1528_s21 = sphi %s1577_s21, %s1915_s21   ;;  %s1524_s20 = sphi %s1575_s20, %s1914_s20   ;;  %s1520_s19 = sphi %s1573_s19, %s1913_s19   ;;  %s1516_s18 = sphi %s1571_s18, %s1912_s18  }
   0x7   : > { %p42_p0 = scmp.ne.s32.totalorder %s1520_s19, %s1516_s18  ;;  %p1888_p1 = scmp.eq.s32.totalorder %s1592_s22, 0 }
   0x8   : > { %p156_p3 = scmp.eq.s32.totalorder %s1088_s23, 1  ;;  %p1089_p5 = scmp.ge.s32.totalorder %s1528_s21, 1 }
   0x9   : > { %p1601_p4 = por %p1888_p1, %p42_p0  ;;  %p163_p7 = scmp.lt.s32.totalorder %s1528_s21, 3 }
   0xa   : > { %p1606_p6 = por %p156_p3, %p42_p0  ;;  %s1530_s27 = smov [#allocation7]  }
   0xb   : > { %s1891_s24 = scalar_select %p1601_p4, 1, 0 }
   0xc   : > { %s1892_s25 = scalar_select %p1606_p6, 1, 0 }
   0xd   : > { %p1611_p8 = pnand %p1089_p5, %p163_p7  ;;  %s175_s28 = sshll.u32 %s1530_s27, 4  ;;  %s1615_s28 = int_to_ptr.vmem [resolvable:$true] %s175_s28 }
   0xe   : > { %s1531_s30 = smov [#allocation9]   ;;  %s1372_s9 = scalar_lea.hbm %s1883_s1, 3072 }
   0xf   : > { %p1242_p9 = pneg %p1611_p8  ;;  %s188_s6 = sshll.u32 %s1531_s30, 4  ;;  %s1626_s6 = int_to_ptr.vmem [resolvable:$true] %s188_s6 }
  0x10   : > { %p1373_p12 = scmp.ne.s32.totalorder %s1883_s1, %s1372_s9  ;;  %p1379_p5 = scmp.lt.u32.totalorder %s1372_s9, %s1883_s1 }
  0x11   : > { %p1622_p11 = pnand %p1242_p9, %p1888_p1 }
  0x13   : > { %p1374_p13 = pneg %p1622_p11 }
  0x15   : > { %p1375_p0 = pnand %p1374_p13, %p1373_p12 }
  0x17   : > { %p1376_p3 = pneg %p1375_p0 }
  0x19   : > { %p1381_p7 = pnand %p1379_p5, %p1376_p3 }
  0x1b   : > { %1384 = shalt.err (!%p1381_p7)
}
  0x1c   : > { %s1385_s14 = scalar_lea.vmem %s1615_s28, 3072  ;;  %p1393_p2 = scmp.lt.s32.totalorder %s1615_s28, %s1615_s28 }
  0x1d   : > { %p1386_p9 = scmp.ne.s32.totalorder %s1615_s28, %s1385_s14  ;;  %p1394_p12 = scmp.lt.s32.totalorder %s1385_s14, %s1385_s14 }
  0x1f   : > { %p1388_p10 = pnand %p1386_p9, %p1374_p13  ;;  %p1395_p0 = por %p1394_p12, %p1393_p2 }
  0x21   : > { %p1389_p1 = pneg %p1388_p10 }
  0x23   : > { %p1396_p6 = pnand %p1395_p0, %p1389_p1 }
  0x25   : > { %1399 = shalt.err (!%p1396_p6)
}
  0x26   : > { %s1532_s15 = smov 192   ;;  %s1533_s16 = smov 12  }
  0x27   : > { %1245 = dma.hbm_to_vmem [thread:$0]  (!%p1622_p11), %s1883_s1, 3072, %s1615_s28, [#allocation8], %s1532_s15, %s1532_s15, %s1533_s16  }
  0x28   : > { %s1400_s7 = scalar_lea.hbm %s1884_s2, 3072 }
  0x29   : > { %p1401_p2 = scmp.ne.s32.totalorder %s1884_s2, %s1400_s7  ;;  %p1407_p10 = scmp.lt.u32.totalorder %s1400_s7, %s1884_s2 }
  0x2b   : > { %p1403_p1 = pnand %p1401_p2, %p1374_p13 }
  0x2d   : > { %p1404_p6 = pneg %p1403_p1 }
  0x2f   : > { %p1409_p3 = pnand %p1407_p10, %p1404_p6 }
  0x31   : > { %1412 = shalt.err (!%p1409_p3)
}
  0x32   : > { %s1413_s28 = scalar_lea.vmem %s1626_s6, 3072  ;;  %p1421_p12 = scmp.lt.s32.totalorder %s1626_s6, %s1626_s6 }
  0x33   : > { %p1414_p5 = scmp.ne.s32.totalorder %s1626_s6, %s1413_s28  ;;  %p1422_p0 = scmp.lt.s32.totalorder %s1413_s28, %s1413_s28 }
  0x35   : > { %p1416_p7 = pnand %p1414_p5, %p1374_p13  ;;  %p1423_p2 = por %p1422_p0, %p1421_p12 }
  0x37   : > { %p1417_p9 = pneg %p1416_p7 }
  0x39   : > { %p1424_p1 = pnand %p1423_p2, %p1417_p9 }
  0x3b   : > { %1427 = shalt.err (!%p1424_p1)
}
  0x3c   : > { %1248 = dma.hbm_to_vmem [thread:$0]  (!%p1622_p11), %s1884_s2, 3072, %s1626_s6, [#allocation8], %s1532_s15, %s1532_s15, %s1533_s16  }
  0x3d   : > { %s1681_s14 = sadd.s32 1, %s1528_s21   ;;  %s29_s29 = sadd.s32 1, %s1524_s20 }
  0x3e   : > { %s26_s17 = ssub.s32 %s1528_s21, %s1681_s14  ;;  %p36_p13 = scmp.ne.s32.totalorder %s1524_s20, %s1520_s19 }
  0x3f   : > { %p27_p6 = scmp.eq.s32.totalorder %s26_s17, 0  ;;  %p37_p10 = scmp.eq.s32.totalorder %s1528_s21, 0 }
  0x40   : > { %p1895_p3 = scmp.eq.s32.totalorder %s1592_s22, 1  ;;  %p1259_p7 = scmp.lt.s32.totalorder %s1528_s21, 2 }
  0x41   : > { %s1697_s27 = scalar_select %p27_p6, %s1524_s20, %s29_s29  }
  0x42   : > { %p1691_p5 = por %p1895_p3, %p36_p13  ;;  %p38_p9 = por %p37_p10, %p36_p13 }
  0x43   : > { %s208_s30 = sand.u32 1, %s1524_s20   ;;  %s1164_s6 = sshll.u32 %s1528_s21, 8 }
  0x44   : > { %s1896_s23 = scalar_select %p1691_p5, 1, 0 }
  0x45   : > { %s1093_s7 = sshll.u32 %s208_s30, 4  ;;  %s1704_s8 = scalar_lea.hbm %s1882_s0, %s1164_s6 }
  0x46   : > { %s212_s9 = scalar_lea.vmem [#allocation4], %s1093_s7  ;;  %p1708_p11 = pnand %p1259_p7, %p38_p9 }
  0x47   : > { %s219_s10 = sshll.u32 %s212_s9, 4  ;;  %s1712_s28 = scalar_lea.sflag [#allocation5], %s208_s30  ;;  %s1706_s10 = int_to_ptr.vmem [resolvable:$true] %s219_s10 }
  0x48   : > { %s1428_s12 = scalar_lea.hbm %s1704_s8, 256  ;;  %p1430_p0 = pneg %p1708_p11 }
  0x49   : > { %p1429_p12 = scmp.ne.s32.totalorder %s1704_s8, %s1428_s12  ;;  %s1433_s17 = scalar_lea.hbm %s1882_s0, 512 }
  0x4a   : > { %p1434_p13 = scmp.lt.u32.totalorder %s1704_s8, %s1882_s0  ;;  %p1435_p6 = scmp.lt.u32.totalorder %s1433_s17, %s1428_s12 }
  0x4b   : > { %p1431_p2 = pnand %p1430_p0, %p1429_p12  ;;  %p1437_p3 = scmp.lt.u32.totalorder %s1428_s12, %s1704_s8 }
  0x4c   : > { %p1436_p10 = por %p1435_p6, %p1434_p13 }
  0x4d   : > { %p1432_p1 = pneg %p1431_p2 }
  0x4e   : > { %p1438_p7 = por %p1437_p3, %p1436_p10 }
  0x50   : > { %p1439_p9 = pnand %p1438_p7, %p1432_p1 }
  0x52   : > { %1442 = shalt.err (!%p1439_p9)
}
  0x53   : > { %s1443_s30 = scalar_lea.vmem %s1706_s10, 256  ;;  %s1534_s15 = smov [#allocation4]  }
  0x54   : > { %p1444_p12 = scmp.ne.s32.totalorder %s1706_s10, %s1443_s30  ;;  %s1448_s16 = sshll.u32 %s1534_s15, 4  ;;  %s1449_s16 = int_to_ptr.vmem [resolvable:$false] %s1448_s16 }
  0x55   : > { %s1450_s9 = scalar_lea.vmem %s1449_s16, 512  ;;  %p1451_p4 = scmp.lt.s32.totalorder %s1706_s10, %s1449_s16 }
  0x56   : > { %p1446_p2 = pnand %p1444_p12, %p1430_p0  ;;  %p1452_p13 = scmp.lt.s32.totalorder %s1450_s9, %s1443_s30 }
  0x58   : > { %p1447_p5 = pneg %p1446_p2  ;;  %p1453_p6 = por %p1452_p13, %p1451_p4 }
  0x5a   : > { %p1454_p10 = pnand %p1453_p6, %p1447_p5 }
  0x5c   : > { %1457 = shalt.err (!%p1454_p10)
}
  0x5d   : > { %s1535_s12 = smov 128   ;;  %s1536_s13 = smov 8  }
  0x5e   : > { %1252 = dma.hbm_to_vmem [thread:$0]  (!%p1708_p11), %s1704_s8, 256, %s1706_s10, %s1712_s28, %s1535_s12, %s1535_s12, %s1536_s13  }
  0x5f   : > { %231 = sbr.rel (%p1611_p8) target bundleno = 637 (0x27d), region = 40  ;;  %s1743_s29 = sand.u32 (!%p1611_p8), 1, %s1520_s19  }
  0x60   : > { %s1097_s17 = sshll.u32 (!%p1611_p8), %s1743_s29, 4  ;;  %s234_s7 = scalar_lea.sflag (!%p1611_p8), [#allocation5], %s1743_s29 }
  0x61   : > { %s1749_s6 = scalar_lea.vmem (!%p1611_p8), [#allocation4], %s1097_s17  ;;  %p1898_p4 = scmp.ne.s32.totalorder (!%p1611_p8), %s1891_s24, 0 }
  0x66   : > { %1503 = dma.done.wait (%p1898_p4), %s234_s7, 256  }
  0x67   : > { %1505 = vsyncadd (%p1898_p4), %s234_s7, 4294967040  ;;  %p1899_p5 = scmp.eq.s32.totalorder %s1592_s22, 0 }
  0x69   : > { %1507 = dma.done.wait (%p1899_p5), [#allocation8], 6144   ;;  %p1900_p8 = pmov %p1899_p5 }
  0x6a   : > { %v1537_v0 = vmov 0   ;;  %v1304_v1 = vld [vmem:[#allocation7 + $0x4] ss:$12 sps:$4 sm:$0xff]   ;;  %v1306_v2 = vld [vmem:[#allocation7] ss:$12 sps:$4 sm:$0xff]   ;;  %vm275_vm0 = vcmask 1040384  }
  0x6b   : > { %1509 = vsyncadd (%p1900_p8), [#allocation8], 4294961152  ;;  %536 = vmatprep.mubr.bf16.mxu0 %v1537_v0  ;;  %504 = vmatprep.subr.bf16.mxu0 %v1304_v1  ;;  %v1307_v3 = vld [vmem:[#allocation7 + $0x8] ss:$12 sps:$4 sm:$0xff]   ;;  %v1310_v5 = vld [vmem:[#allocation7 + $0x18] ss:$12 sps:$4 sm:$0xff]  }
  0x6c   : > { %505 = vmatpush1.bf16.msra.mxu0 %v1306_v2  ;;  %v1308_v4 = vld [vmem:[#allocation7 + $0x1c] ss:$12 sps:$4 sm:$0xff]   ;;  %1190 = vmatprep.subr.bf16.mxu1 %v1307_v3  ;;  %v1311_v6 = vld [vmem:[#allocation7 + $0x20] ss:$12 sps:$4 sm:$0xff]   ;;  %v1315_v8 = vld [vmem:[#allocation7 + $0x38] ss:$12 sps:$4 sm:$0xff]  }
  0x6d   : > { %1191 = vmatpush3.bf16.msra.mxu1 %v1307_v3  ;;  %506 = vmatprep.subr.bf16.mxu0 %v1308_v4  ;;  %v1312_v7 = vld [vmem:[#allocation7 + $0x34] ss:$12 sps:$4 sm:$0xff]   ;;  %v1314_v9 = vld [vmem:[#allocation7 + $0x30] ss:$12 sps:$4 sm:$0xff]   ;;  %v1316_v10 = vld [vmem:[#allocation7 + $0x4c] ss:$12 sps:$4 sm:$0xff]  }
  0x6e   : > { %1192 = vmatprep.subr.bf16.mxu1 %v1311_v6  ;;  %vm276_vm1 = vsmask.f32 256  ;;  %v1319_v11 = vld [vmem:[#allocation7 + $0x50] ss:$12 sps:$4 sm:$0xff]   ;;  %vm281_vm2 = vsmask.f32 7938 }
  0x6f   : > { %v1318_v12 = vld [vmem:[#allocation7 + $0x48] ss:$12 sps:$4 sm:$0xff]   ;;  %v1320_v13 = vld [vmem:[#allocation7 + $0x64] ss:$12 sps:$4 sm:$0xff]   ;;  %vm1761_vm3 = vmand %vm275_vm0, %vm276_vm1  ;;  %vm300_vm5 = vsmask.f32 4368 }
  0x70   : > { %507 = vmatpush1.bf16.msra.mxu0 %v1310_v5  ;;  %vm1766_vm4 = vmand %vm275_vm0, %vm281_vm2  ;;  %v1323_v16 = vld [vmem:[#allocation7 + $0x68] ss:$12 sps:$4 sm:$0xff]   ;;  %v1322_v17 = vld [vmem:[#allocation7 + $0x60] ss:$12 sps:$4 sm:$0xff]   ;;  %vm322_vm6 = vcmask 1043456   ;;  %vm605_vm9 = vcmask 1046528  }
  0x71   : > { %508 = vmatprep.subr.bf16.mxu0 %v1312_v7  ;;  %1193 = vmatpush3.bf16.msra.mxu1 %v1311_v6  ;;  %v1324_v18 = vld [vmem:[#allocation7 + $0x7c] ss:$12 sps:$4 sm:$0xff]   ;;  %v1326_v19 = vld [vmem:[#allocation7 + $0x78] ss:$12 sps:$4 sm:$0xff]   ;;  %v1327_v20 = vld [vmem:[#allocation7 + $0x80] ss:$12 sps:$4 sm:$0xff]  }
  0x72   : > { %1194 = vmatprep.subr.bf16.mxu1 %v1315_v8  ;;  %v1328_v21 = vld [vmem:[#allocation7 + $0x94] ss:$12 sps:$4 sm:$0xff]   ;;  %v278_v22 = vld [vmem:[#allocation2] sm:$0x1]  ;;  %v283_v26 = vld [vmem:[#allocation2 + $0x8] sm:$0x1] }
  0x73   : > { %v279_v23 = vsel %vm1761_vm3, 0, %v278_v22  ;;  %v1773_v24 = vld [vmem:[%s1749_s6] sm:$0xff]  ;;  %v1776_v25 = vld [vmem:[%s1749_s6 + $0x8] sm:$0xff]  ;;  %v284_v30 = vsel %vm1766_vm4, 0, %v283_v26  ;;  %vm1786_vm7 = vmor %vm276_vm1, %vm300_vm5  ;;  %vm618_vm10 = vcmask 1045504   ;;  %s271_s11 = scalar_lea.vmem [#allocation10], %s1097_s17 }
  0x74   : > { %509 = vmatpush1.bf16.msra.mxu0 %v1314_v9  ;;  %v1331_v27 = vld [vmem:[#allocation7 + $0x98] ss:$12 sps:$4 sm:$0xff]   ;;  %280 = vst [vmem:[#allocation2] sm:$0x1] %v279_v23  ;;  %v1165_v28 = vpack.c.bf16 %v1773_v24, %v1773_v24  ;;  %v1166_v29 = vpack.c.bf16 %v1776_v25, %v1776_v25  ;;  %v1330_v31 = vld [vmem:[#allocation7 + $0x90] ss:$12 sps:$4 sm:$0xff]   ;;  %vm1791_vm8 = vmand %vm322_vm6, %vm281_vm2 }
  0x75   : > { %510 = vmatprep.subr.bf16.mxu0 %v1316_v10  ;;  %1195 = vmatpush3.bf16.msra.mxu1 %v1315_v8  ;;  %285 = vst [vmem:[#allocation2 + $0x8] sm:$0x1] %v284_v30  ;;  %v1332_v32 = vld [vmem:[#allocation7 + $0xac] ss:$12 sps:$4 sm:$0xff]   ;;  %v1335_v38 = vld [vmem:[#allocation7 + $0xb0] ss:$12 sps:$4 sm:$0xff]  }
  0x76   : > { %1196 = vmatprep.subr.bf16.mxu1 %v1319_v11  ;;  %v303_v34 = vshrl.u32 %v1165_v28, 16  ;;  %v306_v35 = vshll.u32 %v1165_v28, 16  ;;  %v311_v36 = vshrl.u32 %v1166_v29, 16  ;;  %v314_v37 = vshll.u32 %v1166_v29, 16  ;;  %v1334_v42 = vld [vmem:[#allocation7 + $0xa8] ss:$12 sps:$4 sm:$0xff]  }
  0x77   : > { %v1340_v54 = vld [vmem:[#allocation9 + $0x4] ss:$12 sps:$4 sm:$0xff]   ;;  %v1338_v55 = vld [vmem:[#allocation9] ss:$12 sps:$4 sm:$0xff]   ;;  %v1341_v56 = vld [vmem:[#allocation9 + $0x8] ss:$12 sps:$4 sm:$0xff]  }
  0x78   : > { %511 = vmatpush1.bf16.msra.mxu0 %v1318_v12  ;;  %v305_v39 = vrot.slane %v303_v34, 7  ;;  %v313_v40 = vrot.slane %v311_v36, 7  ;;  %v286_v57 = vld [vmem:[#allocation3] sm:$0x1]  ;;  %v1344_v59 = vld [vmem:[#allocation9 + $0x1c] ss:$12 sps:$4 sm:$0xff]  }
  0x79   : > { %512 = vmatprep.subr.bf16.mxu0 %v1320_v13  ;;  %1197 = vmatpush3.bf16.msra.mxu1 %v1319_v11  ;;  %v287_v58 = vsel %vm1761_vm3, 0, %v286_v57  ;;  %v1342_v60 = vld [vmem:[#allocation9 + $0x18] ss:$12 sps:$4 sm:$0xff]   ;;  %v1345_v61 = vld [vmem:[#allocation9 + $0x20] ss:$12 sps:$4 sm:$0xff]   ;;  %s1169_s28 = sshll.u32 %s1592_s22, 8 }
  0x7a   : > { %1198 = vmatprep.subr.bf16.mxu1 %v1323_v16  ;;  %v308_v43 = vor.u32 %v306_v35, %v305_v39  ;;  %v309_v44 = vrot.slane %v305_v39, 4  ;;  %v316_v45 = vor.u32 %v314_v37, %v313_v40  ;;  %v318_v46 = vrot.slane %v313_v40, 4  ;;  %288 = vst [vmem:[#allocation3] sm:$0x1] %v287_v58  ;;  %v1348_v62 = vld [vmem:[#allocation9 + $0x34] ss:$12 sps:$4 sm:$0xff]   ;;  %s1836_s9 = scalar_lea.hbm %s1887_s5, %s1169_s28 }
  0x7b   : > { %v324_v47 = vld [vmem:[#allocation2] sm:$0xf]  ;;  %v1346_v63 = vld [vmem:[#allocation9 + $0x30] ss:$12 sps:$4 sm:$0xff]   ;;  %v1349_v1 = vld [vmem:[#allocation9 + $0x38] ss:$12 sps:$4 sm:$0xff]  }
  0x7c   : > { %513 = vmatpush1.bf16.msra.mxu0 %v1322_v17  ;;  %v317_v48 = vsel %vm1786_vm7, %v309_v44, %v316_v45  ;;  %v325_v49 = vsel %vm1791_vm8, %v308_v43, %v324_v47  ;;  %v328_v50 = vld [vmem:[#allocation2 + $0x8] sm:$0x1]  ;;  %v1352_v2 = vld [vmem:[#allocation9 + $0x4c] ss:$12 sps:$4 sm:$0xff]   ;;  %v1350_v3 = vld [vmem:[#allocation9 + $0x48] ss:$12 sps:$4 sm:$0xff]  }
  0x7d   : > { %514 = vmatprep.subr.bf16.mxu0 %v1324_v18  ;;  %1199 = vmatpush3.bf16.msra.mxu1 %v1323_v16  ;;  %326 = vst [vmem:[#allocation2] sm:$0xf] %v325_v49  ;;  %327 = vst [vmem:[#allocation2 + $0x4] sm:$0xf] %v317_v48  ;;  %v329_v51 = vsel %vm1761_vm3, %v318_v46, %v328_v50  ;;  %v1353_v4 = vld [vmem:[#allocation9 + $0x50] ss:$12 sps:$4 sm:$0xff]  }
  0x7e   : > { %1200 = vmatprep.subr.bf16.mxu1 %v1327_v20  ;;  %330 = vst [vmem:[#allocation2 + $0x8] sm:$0x1] %v329_v51  ;;  %v289_v5 = vld [vmem:[#allocation3 + $0x8] sm:$0x1]  ;;  %v1356_v7 = vld [vmem:[#allocation9 + $0x64] ss:$12 sps:$4 sm:$0xff]  }
  0x7f   : > { %v290_v6 = vsel %vm1766_vm4, 0, %v289_v5  ;;  %v1354_v8 = vld [vmem:[#allocation9 + $0x60] ss:$12 sps:$4 sm:$0xff]   ;;  %v1357_v9 = vld [vmem:[#allocation9 + $0x68] ss:$12 sps:$4 sm:$0xff]   ;;  %s996_s30 = sshll.u32 %s271_s11, 4  ;;  %s1838_s30 = int_to_ptr.vmem [resolvable:$true] %s996_s30 }
  0x80   : > { %515 = vmatpush1.bf16.msra.mxu0 %v1326_v19  ;;  %291 = vst [vmem:[#allocation3 + $0x8] sm:$0x1] %v290_v6  ;;  %v1360_v10 = vld [vmem:[#allocation9 + $0x7c] ss:$12 sps:$4 sm:$0xff]   ;;  %v1358_v11 = vld [vmem:[#allocation9 + $0x78] ss:$12 sps:$4 sm:$0xff]  }
  0x81   : > { %516 = vmatprep.subr.bf16.mxu0 %v1328_v21  ;;  %1201 = vmatpush3.bf16.msra.mxu1 %v1327_v20  ;;  %v1361_v12 = vld [vmem:[#allocation9 + $0x80] ss:$12 sps:$4 sm:$0xff]   ;;  %v1362_v15 = vld [vmem:[#allocation9 + $0x90] ss:$12 sps:$4 sm:$0xff]   ;;  %v1365_v16 = vld [vmem:[#allocation9 + $0x98] ss:$12 sps:$4 sm:$0xff]  }
  0x82   : > { %1202 = vmatprep.subr.bf16.mxu1 %v1331_v27  ;;  %v1364_v13 = vld [vmem:[#allocation9 + $0x94] ss:$12 sps:$4 sm:$0xff]   ;;  %v1368_v17 = vld [vmem:[#allocation9 + $0xac] ss:$12 sps:$4 sm:$0xff]   ;;  %v1369_v18 = vld [vmem:[#allocation9 + $0xb0] ss:$12 sps:$4 sm:$0xff]  }
  0x83   : > { %v1366_v19 = vld [vmem:[#allocation9 + $0xa8] ss:$12 sps:$4 sm:$0xff]   ;;  %s983_s12 = scalar_lea.sflag [#allocation6], %s1743_s29  ;;  %s1458_s13 = scalar_lea.vmem %s1838_s30, 256 }
  0x84   : > { %517 = vmatpush1.bf16.msra.mxu0 %v1330_v31  ;;  %v1336_v52 = vld [vmem:[#allocation2] sm:$0xff]   ;;  %p1459_p11 = scmp.ne.s32.totalorder %s1838_s30, %s1458_s13  ;;  %p1909_p0 = scmp.ne.s32.totalorder %s1896_s23, 0 }
  0x85   : > { %518 = vmatprep.subr.bf16.mxu0 %v1332_v32  ;;  %1203 = vmatpush3.bf16.msra.mxu1 %v1331_v27  ;;  %v1337_v53 = vld [vmem:[#allocation2 + $0x8] ss:$0 sps:$4 sm:$0xff]   ;;  %v1129_v40 = vld [vmem:[%s1885_s3] ss:$0 sm:$0xff]  ;;  %s1538_s22 = smov [#allocation10]  }
  0x86   : > { %1204 = vmatprep.subr.bf16.mxu1 %v1335_v38  ;;  %1206 = vmatprep.mubr.bf16.mxu1 %v1336_v52  ;;  %p1460_p1 = pnand %p1459_p11, %p1909_p0  ;;  %s1462_s17 = sshll.u32 %s1538_s22, 4  ;;  %s1463_s17 = int_to_ptr.vmem [resolvable:$false] %s1462_s17 }
  0x87   : > { %s1464_s7 = scalar_lea.vmem %s1463_s17, 512  ;;  %p1465_p7 = scmp.lt.s32.totalorder %s1838_s30, %s1463_s17 }
  0x88   : > { %519 = vmatpush1.bf16.msra.mxu0 %v1334_v42  ;;  %p1461_p3 = pneg %p1460_p1  ;;  %p1466_p9 = scmp.lt.s32.totalorder %s1464_s7, %s1458_s13 }
  0x89   : > { %1205 = vmatpush3.bf16.msra.mxu1 %v1335_v38  ;;  %845 = vmatprep.subr.bf16.mxu0 %v1340_v54 }
  0x8a   : > { %1210 = vmatprep.subr.bf16.mxu1 %v1341_v56  ;;  %p1467_p12 = por %p1466_p9, %p1465_p7 }
  0x8b   : > { %537 = vmatmul.mubr.bf16.vlgmr.msra.gmra.mrb[0].mxu0 %v1336_v52 }
  0x8c   : > { %1207 = vmatmul.mubr.bf16.vlgmr.msra.gmra.mrb[0].mxu1 %v1337_v53  ;;  %546 = vmatprep.mubr.bf16.mxu0 %v1537_v0  ;;  %p1468_p2 = pnand %p1467_p12, %p1461_p3 }
  0x8d   : > { %846 = vmatpush1.bf16.msra.mxu0 %v1338_v55  ;;  %1211 = vmatpush3.bf16.msra.mxu1 %v1341_v56 }
  0x8e   : > { %847 = vmatprep.subr.bf16.mxu0 %v1344_v59  ;;  %1212 = vmatprep.subr.bf16.mxu1 %v1345_v61  ;;  %v665_v59 = vld [vmem:[#allocation3] sm:$0xf] }
  0x91   : > { %848 = vmatpush1.bf16.msra.mxu0 %v1342_v60  ;;  %1213 = vmatpush3.bf16.msra.mxu1 %v1345_v61 }
  0x92   : > { %849 = vmatprep.subr.bf16.mxu0 %v1348_v62  ;;  %1214 = vmatprep.subr.bf16.mxu1 %v1349_v1 }
  0x93   : > { %547 = vmatmul.mubr.bf16.gmra.mrb[4].mxu0 %v1337_v53 }
  0x94   : > { %877 = vmatprep.mubr.bf16.mxu0 %v1537_v0 }
  0x95   : > { %850 = vmatpush1.bf16.msra.mxu0 %v1346_v63  ;;  %1215 = vmatpush3.bf16.msra.mxu1 %v1349_v1 }
  0x96   : > { %851 = vmatprep.subr.bf16.mxu0 %v1352_v2  ;;  %1216 = vmatprep.subr.bf16.mxu1 %v1353_v4 }
  0x99   : > { %852 = vmatpush1.bf16.msra.mxu0 %v1350_v3  ;;  %1217 = vmatpush3.bf16.msra.mxu1 %v1353_v4  ;;  %v669_v3 = vld [vmem:[#allocation3 + $0x8] sm:$0x1] }
  0x9a   : > { %853 = vmatprep.subr.bf16.mxu0 %v1356_v7  ;;  %1218 = vmatprep.subr.bf16.mxu1 %v1357_v9 }
  0x9d   : > { %854 = vmatpush1.bf16.msra.mxu0 %v1354_v8  ;;  %1219 = vmatpush3.bf16.msra.mxu1 %v1357_v9 }
  0x9e   : > { %855 = vmatprep.subr.bf16.mxu0 %v1360_v10  ;;  %1220 = vmatprep.subr.bf16.mxu1 %v1361_v12 }
  0xa1   : > { %856 = vmatpush1.bf16.msra.mxu0 %v1358_v11  ;;  %1221 = vmatpush3.bf16.msra.mxu1 %v1361_v12 }
  0xa2   : > { %857 = vmatprep.subr.bf16.mxu0 %v1364_v13  ;;  %1222 = vmatprep.subr.bf16.mxu1 %v1365_v16 }
  0xa5   : > { %858 = vmatpush1.bf16.msra.mxu0 %v1362_v15  ;;  %1223 = vmatpush3.bf16.msra.mxu1 %v1365_v16 }
  0xa6   : > { %859 = vmatprep.subr.bf16.mxu0 %v1368_v17  ;;  %1224 = vmatprep.subr.bf16.mxu1 %v1369_v18 }
  0xa9   : > { %860 = vmatpush1.bf16.msra.mxu0 %v1366_v19  ;;  %1225 = vmatpush3.bf16.msra.mxu1 %v1369_v18 }
 0x15e   : > { %v538_v20 = vpop.f32.mrb[0].mxu0 }
 0x15f   : > { %v540_v21 = vpop.f32.mrb[1].mxu0  ;;  %v1208_v22 = vpop.f32.mrb[0].mxu1 }
 0x160   : > { %v542_v23 = vpop.f32.mrb[2].mxu0  ;;  %v588_v26 = vpop.f32.mrb[1].mxu1  ;;  %v622_v27 = vrot.slane %v1208_v22, 2  ;;  %v606_v31 = vrot.slane %v540_v21, 1 }
 0x161   : > { %v544_v28 = vpop.f32.mrb[3].mxu0  ;;  %v619_v29 = vrot.slane %v588_v26, 2  ;;  %v1209_v30 = vpop.f32.mrb[2].mxu1 }
 0x162   : > { %v607_v32 = vrot.slane %v544_v28, 1  ;;  %v591_v34 = vpop.f32.mrb[3].mxu1 }
 0x163   : > { %v620_v35 = vrot.slane %v591_v34, 2 }
 0x164   : > { %v608_v36 = vsel %vm605_vm9, %v606_v31, %v607_v32 }
 0x165   : > { %v613_v37 = vadd.f32 %v608_v36, %v538_v20  ;;  %v621_v38 = vsel %vm618_vm10, %v619_v29, %v620_v35  ;;  %v623_v39 = vsel %vm618_vm10, %v620_v35, %v622_v27  ;;  %v1158_v27 = vld [vmem:[%s1886_s4] ss:$0 sm:$0xff] }
 0x166   : > { %v548_v42 = vpop.f32.mrb[4].mxu0 }
 0x167   : > { %v626_v43 = vadd.f32 %v621_v38, %v613_v37  ;;  %v549_v44 = vpop.f32.mrb[5].mxu0 }
 0x168   : > { %v609_v45 = vrot.slane %v549_v44, 1  ;;  %v551_v46 = vpop.f32.mrb[6].mxu0 }
 0x169   : > { %v635_v47 = vadd.f32 %v1129_v40, %v626_v43  ;;  %v552_v48 = vpop.f32.mrb[7].mxu0 }
 0x16a   : > { %v610_v49 = vsel %vm605_vm9, %v607_v32, %v609_v45 }
 0x16b   : > { %v637_v50 = vmax.f32 %v635_v47, 0.0  ;;  %v614_v51 = vadd.f32 %v610_v49, %v542_v23 }
 0x16d   : > { %v1167_v52 = vpack.c.bf16 %v637_v50, %v637_v50  ;;  %v627_v53 = vadd.f32 %v623_v39, %v614_v51 }
 0x16f   : > { %v646_v54 = vshrl.u32 %v1167_v52, 16  ;;  %v636_v55 = vadd.f32 %v1129_v40, %v627_v53  ;;  %v649_v57 = vshll.u32 %v1167_v52, 16 }
 0x171   : > { %v648_v56 = vrot.slane %v646_v54, 7  ;;  %v638_v58 = vmax.f32 %v636_v55, 0.0 }
 0x173   : > { %v651_v60 = vor.u32 %v649_v57, %v648_v56  ;;  %v1168_v61 = vpack.c.bf16 %v638_v58, %v638_v58  ;;  %v652_v4 = vrot.slane %v648_v56, 4 }
 0x175   : > { %v666_v62 = vsel %vm1791_vm8, %v651_v60, %v665_v59  ;;  %v654_v63 = vshrl.u32 %v1168_v61, 16  ;;  %v657_v2 = vshll.u32 %v1168_v61, 16 }
 0x176   : > { %667 = vst [vmem:[#allocation3] sm:$0xf] %v666_v62 }
 0x177   : > { %v656_v1 = vrot.slane %v654_v63, 7 }
 0x179   : > { %v659_v5 = vor.u32 %v657_v2, %v656_v1  ;;  %v661_v6 = vrot.slane %v656_v1, 4 }
 0x17b   : > { %v660_v7 = vsel %vm1786_vm7, %v652_v4, %v659_v5  ;;  %v670_v8 = vsel %vm1761_vm3, %v661_v6, %v669_v3 }
 0x17c   : > { %668 = vst [vmem:[#allocation3 + $0x4] sm:$0xf] %v660_v7  ;;  %671 = vst [vmem:[#allocation3 + $0x8] sm:$0x1] %v670_v8 }
 0x183   : > { %v1370_v9 = vld [vmem:[#allocation3] sm:$0xff]   ;;  %v1371_v10 = vld [vmem:[#allocation3 + $0x8] ss:$0 sps:$4 sm:$0xff]  }
 0x184   : > { %878 = vmatmul.mubr.bf16.vlgmr.msra.gmra.mrb[8].mxu0 %v1370_v9  ;;  %1226 = vmatprep.mubr.bf16.mxu1 %v1370_v9 }
 0x185   : > { %1227 = vmatmul.mubr.bf16.vlgmr.msra.gmra.mrb[4].mxu1 %v1371_v10  ;;  %887 = vmatprep.mubr.bf16.mxu0 %v1537_v0 }
 0x18c   : > { %888 = vmatmul.mubr.bf16.gmra.mrb[12].mxu0 %v1371_v10 }
 0x257   : > { %v879_v41 = vpop.f32.mrb[8].mxu0 }
 0x258   : > { %v881_v11 = vpop.f32.mrb[9].mxu0  ;;  %v1228_v12 = vpop.f32.mrb[4].mxu1 }
 0x259   : > { %v883_v13 = vpop.f32.mrb[10].mxu0  ;;  %v929_v15 = vpop.f32.mrb[5].mxu1  ;;  %v946_v17 = vrot.slane %v881_v11, 1  ;;  %v961_v19 = vrot.slane %v1228_v12, 2 }
 0x25a   : > { %v885_v33 = vpop.f32.mrb[11].mxu0  ;;  %v1229_v16 = vpop.f32.mrb[6].mxu1  ;;  %v958_v20 = vrot.slane %v929_v15, 2 }
 0x25b   : > { %v947_v14 = vrot.slane %v885_v33, 1  ;;  %v932_v18 = vpop.f32.mrb[7].mxu1 }
 0x25c   : > { %v959_v21 = vrot.slane %v932_v18, 2 }
 0x25d   : > { %v948_v22 = vsel %vm605_vm9, %v946_v17, %v947_v14 }
 0x25e   : > { %v953_v23 = vadd.f32 %v948_v22, %v879_v41  ;;  %v960_v0 = vsel %vm618_vm10, %v958_v20, %v959_v21  ;;  %v962_v26 = vsel %vm618_vm10, %v959_v21, %v961_v19 }
 0x25f   : > { %v889_v28 = vpop.f32.mrb[12].mxu0 }
 0x260   : > { %v965_v29 = vadd.f32 %v960_v0, %v953_v23  ;;  %v890_v30 = vpop.f32.mrb[13].mxu0 }
 0x261   : > { %v949_v31 = vrot.slane %v890_v30, 1  ;;  %v892_v32 = vpop.f32.mrb[14].mxu0 }
 0x262   : > { %v974_v34 = vadd.f32 %v1158_v27, %v965_v29  ;;  %v893_v35 = vpop.f32.mrb[15].mxu0 }
 0x263   : > { %v950_v36 = vsel %vm605_vm9, %v947_v14, %v949_v31 }
 0x264   : > { %v976_v37 = vadd.f32 %v974_v34, %v1773_v24  ;;  %v954_v38 = vadd.f32 %v950_v36, %v883_v13 }
 0x266   : > { %v978_v39 = vmax.f32 %v976_v37, 0.0  ;;  %v966_v40 = vadd.f32 %v962_v26, %v954_v38 }
 0x268   : > { %980 = vst [vmem:[%s271_s11] sm:$0xff] %v978_v39  ;;  %v975_v42 = vadd.f32 %v1158_v27, %v966_v40 }
 0x26a   : > { %v977_v43 = vadd.f32 %v975_v42, %v1776_v25 }
 0x26c   : > { %v979_v24 = vmax.f32 %v977_v43, 0.0 }
 0x26e   : > { %981 = vst [vmem:[%s271_s11 + $0x8] sm:$0xff] %v979_v24 }
 0x26f   : > { %1471 = shalt.err (!%p1468_p2)
}
 0x270   : > { %s1472_s6 = scalar_lea.hbm %s1836_s9, 256  ;;  %s1476_s8 = scalar_lea.hbm %s1887_s5, 512 }
 0x271   : > { %p1473_p13 = scmp.ne.s32.totalorder %s1836_s9, %s1472_s6  ;;  %p1477_p4 = scmp.lt.u32.totalorder %s1836_s9, %s1887_s5 }
 0x272   : > { %p1478_p5 = scmp.lt.u32.totalorder %s1476_s8, %s1472_s6  ;;  %p1480_p11 = scmp.lt.u32.totalorder %s1472_s6, %s1836_s9 }
 0x273   : > { %p1474_p6 = pnand %p1473_p13, %p1909_p0 }
 0x274   : > { %p1479_p8 = por %p1478_p5, %p1477_p4 }
 0x275   : > { %p1475_p10 = pneg %p1474_p6 }
 0x276   : > { %p1481_p1 = por %p1480_p11, %p1479_p8 }
 0x278   : > { %p1482_p3 = pnand %p1481_p1, %p1475_p10 }
 0x27a   : > { %1485 = shalt.err (!%p1482_p3)
}
 0x27b   : > { %s1539_s28 = smov 128   ;;  %s1540_s15 = smov 8  }
 0x27c   : > { %1240 = dma.vmem_to_hbm [thread:$0]  (%p1909_p0), %s1838_s30, 256, %s1836_s9, %s983_s12, %s1539_s28, %s1539_s28, %s1540_s15  }
 0x27d PF: > { %s1011_s16 = sand.u32 1, %s1516_s18   ;;  %p1910_p7 = scmp.ne.s32.totalorder %s1892_s25, 0 }
 0x27e   : > { %p1911_p9 = scmp.ge.s32.totalorder %s1528_s21, 2  ;;  %s1012_s13 = scalar_lea.sflag [#allocation6], %s1011_s16 }
 0x280   : > { %p1254_p12 = pnand %p1911_p9, %p1910_p7 }
 0x282   : > { %1511 = dma.done.wait (!%p1254_p12), %s1012_s13, 256  }
 0x283   : > { %1513 = vsyncadd (!%p1254_p12), %s1012_s13, 4294967040  ;;  %p19_p2 = scmp.ge.s32.totalorder %s1681_s14, 4   ;;  %s1912_s18 = smov %s1520_s19 }
 0x284   : > { %s1913_s19 = smov %s1524_s20  ;;  %s1914_s20 = smov %s1697_s27 }
 0x285   : > { %s1915_s21 = smov %s1681_s14  ;;  %21 = sbr.rel (!%p19_p2) target bundleno = 6 (0x6), region = 93 }
 0x28c   :  { %1017 = vsyncpa [#allocation5], 1 }
 0x28d   :  { %1019 = vsyncpa [#allocation5 + $0x1], 1 }
 0x28e   :  { %1020 = vsyncpa [#allocation8], 1 }
 0x28f   :  { %1021 = vsyncpa [#allocation6], 1 }
 0x290   :  { %1023 = vsyncpa [#allocation6 + $0x1], 1 }

</bundles_post_ra>
